<compile_context>
chip_gen: v5e
topology: v5e:2x2
jax: 0.10.0
libtpu: 0.0.40
codegen_flags: <defaults>
</compile_context>

<pallas_src>
import functools

import jax
import jax.numpy as jnp
from jax.experimental import pallas as pl
from jax.experimental.pallas import tpu as pltpu

LANE = 128


def _round_up(x, m):
    return (x + m - 1) // m * m


# --------------------------------------------------------------------------
# Fused Pallas kernel: whole network for one batch tile
# --------------------------------------------------------------------------
def _fused_net_kernel(plan, *refs):
    """refs = [x_ref, (w_ref, b_ref) per layer ..., out_ref].

    plan: tuple of (kind, padded_out_dim) with kind in {"proj", "id", "out"}.
      proj: w_ref is [d_in, 2*d_out_pad] = concat(W, W_res) along lanes.
      id  : w_ref is [d_in, d_out_pad], residual is identity.
      out : final linear layer (no activation, no residual).
    """
    out_ref = refs[-1]
    x = refs[0][...]                      # bf16 activation tile (TILE_M, d_in)
    idx = 1
    for kind, pdo in plan:
        w = refs[idx][...]                # bf16 padded (maybe concatenated) weights
        b = refs[idx + 1][...]            # f32 (1, d_out_pad) bias row (broadcasts)
        idx += 2
        xb = x if x.dtype == jnp.bfloat16 else x.astype(jnp.bfloat16)
        y = jnp.dot(xb, w, preferred_element_type=jnp.float32)
        if kind == "proj":
            # one matmul covers both fc and res_fc: split the lane axis
            x = jnp.maximum(y[:, :pdo] + b, 0.0) + y[:, pdo:]
        elif kind == "id":
            x = jnp.maximum(y + b, 0.0) + x.astype(jnp.float32)
        else:  # "out"
            x = y + b
    out_ref[...] = x.astype(out_ref.dtype)


# --------------------------------------------------------------------------
# Parameter construction (deterministic, PyTorch-Linear-style uniform init)
# --------------------------------------------------------------------------
def init_params(key, input_dim, output_dim, hidden_layer_dims):
    dims = [input_dim] + list(hidden_layer_dims)
    params = {"fcs": [], "res_fcs": []}
    for i in range(len(dims) - 1):
        fan_in, fan_out = dims[i], dims[i + 1]
        bound = 1.0 / jnp.sqrt(fan_in)
        key, kw, kb, kr = jax.random.split(key, 4)
        w = jax.random.uniform(kw, (fan_in, fan_out), jnp.float32, -bound, bound)
        b = jax.random.uniform(kb, (1, fan_out), jnp.float32, -bound, bound)
        params["fcs"].append((w, b))
        if fan_in != fan_out:
            wres = jax.random.uniform(kr, (fan_in, fan_out), jnp.float32,
                                      -bound, bound)
            params["res_fcs"].append(wres)
        else:
            params["res_fcs"].append(None)  # nn.Identity
    fan_in = dims[-1]
    bound = 1.0 / jnp.sqrt(fan_in)
    key, kw, kb = jax.random.split(key, 3)
    params["fc_out"] = (
        jax.random.uniform(kw, (fan_in, output_dim), jnp.float32, -bound, bound),
        jax.random.uniform(kb, (1, output_dim), jnp.float32, -bound, bound),
    )
    return params


def pack_params(params, input_dim):
    """Pad hidden dims to lane multiples, fuse W/W_res, cast weights to bf16.

    The INPUT feature dim is kept unpadded (true d_in HBM stream) unless the
    first block is an identity-residual block with a non-lane-multiple width,
    in which case we pad it so the residual add stays shape-consistent.
    """
    first_is_id = bool(params["res_fcs"]) and params["res_fcs"][0] is None
    if first_is_id and input_dim % LANE != 0:
        in_dim_kernel = _round_up(input_dim, LANE)
    else:
        in_dim_kernel = input_dim

    plan, flat = [], []
    prev_pad = in_dim_kernel
    for (w, b), wres in zip(params["fcs"], params["res_fcs"]):
        di, do = w.shape
        pdi, pdo = prev_pad, _round_up(do, LANE)
        wp = jnp.zeros((pdi, pdo), jnp.float32).at[:di, :do].set(w)
        bp = jnp.zeros((1, pdo), jnp.float32).at[:, :do].set(b)
        if wres is None:
            plan.append(("id", pdo))
            flat += [wp.astype(jnp.bfloat16), bp]
        else:
            wrp = jnp.zeros((pdi, pdo), jnp.float32).at[:di, :do].set(wres)
            wcat = jnp.concatenate([wp, wrp], axis=1)       # (pdi, 2*pdo)
            plan.append(("proj", pdo))
            flat += [wcat.astype(jnp.bfloat16), bp]
        prev_pad = pdo

    w_out, b_out = params["fc_out"]
    di, do = w_out.shape
    pdi, pdo = prev_pad, _round_up(do, LANE)
    wp = jnp.zeros((pdi, pdo), jnp.float32).at[:di, :do].set(w_out)
    bp = jnp.zeros((1, pdo), jnp.float32).at[:, :do].set(b_out)
    plan.append(("out", pdo))
    flat += [wp.astype(jnp.bfloat16), bp]

    return {
        "plan": tuple(plan),
        "flat": flat,
        "in_dim": input_dim,
        "in_dim_kernel": in_dim_kernel,
        "output_dim": do,
        "out_dim_pad": pdo,
    }


# --------------------------------------------------------------------------
# Tiling / VMEM-budget heuristics
# --------------------------------------------------------------------------
def _choose_tiling(n, target=1024):
    """Pick (tile_m, n_pad): big tiles to amortize per-step overhead, >=2
    parallel grid steps when the batch allows it (v7x dual-TC), small padding.
    tile_m is a multiple of 16 (bf16 sublane packing)."""
    n16 = _round_up(max(n, 8), 16)
    grid = max(1, pl.cdiv(n16, target))
    if grid == 1 and n16 >= 32:
        grid = 2                      # keep both v7x TensorCores busy
    tile_m = _round_up(pl.cdiv(n16, grid), 16)
    return tile_m, tile_m * grid


def _vmem_limit_bytes(tile_m, d_in_k, d_out_pad, flat, plan):
    """Footprint-derived VMEM limit, capped generation-aware."""
    weight_bytes = sum(int(a.size) * a.dtype.itemsize for a in flat)
    max_w = max(2 * p if k == "proj" else p for k, p in plan)
    need = (2 * weight_bytes                 # weights/biases (double-buffered)
            + 2 * tile_m * d_in_k * 2        # bf16 input tile x2
            + 2 * tile_m * d_out_pad * 4     # f32 output tile x2
            + 4 * tile_m * max_w * 4)        # live f32 intermediates
    need = int(need * 1.5) + (8 << 20)       # margin + compiler scratch
    cap = 48 << 20                           # safe everywhere (v7x: 64 MiB/TC)
    try:
        cap = max(cap, int(pltpu.get_tpu_info().vmem_capacity_bytes * 3 // 4))
    except Exception:
        pass
    return max(32 << 20, min(need, cap))


# --------------------------------------------------------------------------
# Forward pass: one fused pallas_call, batch tiled on a parallel grid axis
# --------------------------------------------------------------------------
def residual_network_pallas(packed, x, *, tile_m=None):
    plan = packed["plan"]
    flat = packed["flat"]
    n, d_in = x.shape
    d_in_k = packed["in_dim_kernel"]
    d_out_pad = packed["out_dim_pad"]

    if tile_m is None:
        tile_m, n_pad = _choose_tiling(n)
    else:
        assert tile_m % 8 == 0, "tile_m must be a multiple of 8"
        n_pad = _round_up(n, tile_m)
    grid = n_pad // tile_m

    # bf16 input stream (halves input DMA); feature dim kept at its true size.
    x_pad = jnp.zeros((n_pad, d_in_k), jnp.bfloat16).at[:n, :d_in].set(
        x.astype(jnp.bfloat16))

    in_specs = [pl.BlockSpec((tile_m, d_in_k), lambda i: (i, 0))]
    for a in flat:
        # Full-array weight/bias blocks; constant index_map -> DMA'd once,
        # VMEM-resident for the whole grid.
        in_specs.append(pl.BlockSpec(a.shape, lambda i: (0, 0)))
    out_specs = pl.BlockSpec((tile_m, d_out_pad), lambda i: (i, 0))

    flops = 2 * n_pad * sum(int(w.shape[0]) * int(w.shape[1]) for w in flat[0::2])
    bytes_accessed = (
        int(x_pad.size) * x_pad.dtype.itemsize
        + sum(int(a.size) * a.dtype.itemsize for a in flat)
        + n_pad * d_out_pad * 4
    )

    out = pl.pallas_call(
        functools.partial(_fused_net_kernel, plan),
        out_shape=jax.ShapeDtypeStruct((n_pad, d_out_pad), jnp.float32),
        grid=(grid,),
        in_specs=in_specs,
        out_specs=out_specs,
        compiler_params=pltpu.CompilerParams(
            dimension_semantics=("parallel",),     # megacore / v7x dual-TC
            vmem_limit_bytes=_vmem_limit_bytes(tile_m, d_in_k, d_out_pad,
                                               flat, plan),
        ),
        cost_estimate=pl.CostEstimate(
            flops=flops, transcendentals=0, bytes_accessed=bytes_accessed),
    )(x_pad, *flat)

    return out[:n, :packed["output_dim"]]


# --------------------------------------------------------------------------
# Pure-JAX references
# --------------------------------------------------------------------------
def residual_network_ref(params, x):
    """f32 reference matching the PyTorch forward semantics."""
    for (w, b), wres in zip(params["fcs"], params["res_fcs"]):
        res = x if wres is None else x @ wres
        x = jnp.maximum(x @ w + b, 0.0) + res
    w_out, b_out = params["fc_out"]
    return x @ w_out + b_out


def residual_network_ref_bf16(params, x):
    """Reference emulating the kernel: bf16 input stream, bf16 matmuls,
    f32 accumulation / bias / ReLU / residual."""
    def mm(a, w):
        return jnp.dot(a.astype(jnp.bfloat16), w.astype(jnp.bfloat16),
                       preferred_element_type=jnp.float32)
    x = x.astype(jnp.bfloat16).astype(jnp.float32)   # host-side bf16 input cast
    for (w, b), wres in zip(params["fcs"], params["res_fcs"]):
        res = x if wres is None else mm(x, wres)
        x = jnp.maximum(mm(x, w) + b, 0.0) + res
    w_out, b_out = params["fc_out"]
    return mm(x, w_out) + b_out


# --------------------------------------------------------------------------
if __name__ == "__main__":
    key = jax.random.PRNGKey(0)
    key, kx, kp = jax.random.split(key, 3)

    batch = 32
    input_dim = 16
    hidden_layer_dims = [32, 64, 64]   # exercises both projection + identity res
    output_dim = 8

    x = jax.random.normal(kx, (batch, input_dim), jnp.float32)
    params = init_params(kp, input_dim, output_dim, hidden_layer_dims)
    packed = pack_params(params, input_dim)

    # Auto tiling: grid=(2,), tile_m=16 -> both v7x TensorCores exercised.
    out = jax.block_until_ready(residual_network_pallas(packed, x))
    # Explicit single-tile path (grid=(1,)) to exercise the other code path.
    out_1tile = jax.block_until_ready(
        residual_network_pallas(packed, x, tile_m=32))

    ref_bf16 = residual_network_ref_bf16(params, x)
    ref_f32 = residual_network_ref(params, x)

    assert out.shape == (batch, output_dim), out.shape
    assert jnp.allclose(out, ref_bf16, atol=5e-4, rtol=5e-4), (
        float(jnp.max(jnp.abs(out - ref_bf16))))
    assert jnp.allclose(out_1tile, ref_bf16, atol=5e-4, rtol=5e-4), (
        float(jnp.max(jnp.abs(out_1tile - ref_bf16))))
    # bf16 matmuls/input vs full-f32 semantics: loose sanity bound
    assert float(jnp.max(jnp.abs(out - ref_f32))) < 0.3

    print("KERNEL_OK")
</pallas_src>

<mosaic_0001>
module attributes {stable_mosaic.version = 11 : i64} {
  func.func @_fused_net_kernel(%arg0: i32, %arg1: memref<16x16xbf16, #tpu.memory_space<vmem>>, %arg2: memref<16x256xbf16, #tpu.memory_space<vmem>>, %arg3: memref<1x128xf32, #tpu.memory_space<vmem>>, %arg4: memref<128x256xbf16, #tpu.memory_space<vmem>>, %arg5: memref<1x128xf32, #tpu.memory_space<vmem>>, %arg6: memref<128x128xbf16, #tpu.memory_space<vmem>>, %arg7: memref<1x128xf32, #tpu.memory_space<vmem>>, %arg8: memref<128x128xbf16, #tpu.memory_space<vmem>>, %arg9: memref<1x128xf32, #tpu.memory_space<vmem>>, %arg10: memref<16x128xf32, #tpu.memory_space<vmem>>) attributes {dimension_semantics = [#tpu.dimension_semantics<parallel>], iteration_bounds = array<i64: 2>, scalar_prefetch = 0 : i64, scratch_operands = 0 : i64, tpu.core_type = #tpu.core_type<tc>, window_params = [{transform_indices = @transform_0, window_bounds = array<i64: 16, 16>}, {pipeline_mode = #tpu.pipeline_mode<synchronous>, transform_indices = @transform_1, window_bounds = array<i64: 16, 256>}, {pipeline_mode = #tpu.pipeline_mode<synchronous>, transform_indices = @transform_2, window_bounds = array<i64: 1, 128>}, {pipeline_mode = #tpu.pipeline_mode<synchronous>, transform_indices = @transform_3, window_bounds = array<i64: 128, 256>}, {pipeline_mode = #tpu.pipeline_mode<synchronous>, transform_indices = @transform_4, window_bounds = array<i64: 1, 128>}, {pipeline_mode = #tpu.pipeline_mode<synchronous>, transform_indices = @transform_5, window_bounds = array<i64: 128, 128>}, {pipeline_mode = #tpu.pipeline_mode<synchronous>, transform_indices = @transform_6, window_bounds = array<i64: 1, 128>}, {pipeline_mode = #tpu.pipeline_mode<synchronous>, transform_indices = @transform_7, window_bounds = array<i64: 128, 128>}, {pipeline_mode = #tpu.pipeline_mode<synchronous>, transform_indices = @transform_8, window_bounds = array<i64: 1, 128>}, {transform_indices = @transform_9, window_bounds = array<i64: 16, 128>}]} {
    %c0 = arith.constant 0 : index
    %c0_0 = arith.constant 0 : index
    %0 = vector.load %arg1[%c0, %c0_0] : memref<16x16xbf16, #tpu.memory_space<vmem>>, vector<16x16xbf16>
    %c0_1 = arith.constant 0 : index
    %c0_2 = arith.constant 0 : index
    %1 = vector.load %arg2[%c0_1, %c0_2] : memref<16x256xbf16, #tpu.memory_space<vmem>>, vector<16x256xbf16>
    %c0_3 = arith.constant 0 : index
    %c0_4 = arith.constant 0 : index
    %2 = vector.load %arg3[%c0_3, %c0_4] : memref<1x128xf32, #tpu.memory_space<vmem>>, vector<1x128xf32>
    %cst = arith.constant dense<0.000000e+00> : vector<16x256xf32>
    %3 = tpu.matmul %0, %1, %cst {dimension_numbers = #tpu.dot_dimension_numbers<[1], [0], [0], [1], [0, 0, 1, 1], [], []>} : vector<16x16xbf16>, vector<16x256xbf16>, vector<16x256xf32> -> vector<16x256xf32>
    %4 = vector.extract_strided_slice %3 {offsets = [0, 0], sizes = [16, 128], strides = [1, 1]} : vector<16x256xf32> to vector<16x128xf32>
    %5 = vector.broadcast %2 : vector<1x128xf32> to vector<16x128xf32>
    %6 = arith.addf %4, %5 : vector<16x128xf32>
    %cst_5 = arith.constant 0.000000e+00 : f32
    %7 = vector.broadcast %cst_5 : f32 to vector<16x128xf32>
    %8 = arith.maximumf %6, %7 : vector<16x128xf32>
    %9 = vector.extract_strided_slice %3 {offsets = [0, 128], sizes = [16, 128], strides = [1, 1]} : vector<16x256xf32> to vector<16x128xf32>
    %10 = arith.addf %8, %9 : vector<16x128xf32>
    %c0_6 = arith.constant 0 : index
    %c0_7 = arith.constant 0 : index
    %11 = vector.load %arg4[%c0_6, %c0_7] : memref<128x256xbf16, #tpu.memory_space<vmem>>, vector<128x256xbf16>
    %c0_8 = arith.constant 0 : index
    %c0_9 = arith.constant 0 : index
    %12 = vector.load %arg5[%c0_8, %c0_9] : memref<1x128xf32, #tpu.memory_space<vmem>>, vector<1x128xf32>
    %13 = arith.truncf %10 : vector<16x128xf32> to vector<16x128xbf16>
    %cst_10 = arith.constant dense<0.000000e+00> : vector<16x256xf32>
    %14 = tpu.matmul %13, %11, %cst_10 {dimension_numbers = #tpu.dot_dimension_numbers<[1], [0], [0], [1], [0, 0, 1, 1], [], []>} : vector<16x128xbf16>, vector<128x256xbf16>, vector<16x256xf32> -> vector<16x256xf32>
    %15 = vector.extract_strided_slice %14 {offsets = [0, 0], sizes = [16, 128], strides = [1, 1]} : vector<16x256xf32> to vector<16x128xf32>
    %16 = vector.broadcast %12 : vector<1x128xf32> to vector<16x128xf32>
    %17 = arith.addf %15, %16 : vector<16x128xf32>
    %cst_11 = arith.constant 0.000000e+00 : f32
    %18 = vector.broadcast %cst_11 : f32 to vector<16x128xf32>
    %19 = arith.maximumf %17, %18 : vector<16x128xf32>
    %20 = vector.extract_strided_slice %14 {offsets = [0, 128], sizes = [16, 128], strides = [1, 1]} : vector<16x256xf32> to vector<16x128xf32>
    %21 = arith.addf %19, %20 : vector<16x128xf32>
    %c0_12 = arith.constant 0 : index
    %c0_13 = arith.constant 0 : index
    %22 = vector.load %arg6[%c0_12, %c0_13] : memref<128x128xbf16, #tpu.memory_space<vmem>>, vector<128x128xbf16>
    %c0_14 = arith.constant 0 : index
    %c0_15 = arith.constant 0 : index
    %23 = vector.load %arg7[%c0_14, %c0_15] : memref<1x128xf32, #tpu.memory_space<vmem>>, vector<1x128xf32>
    %24 = arith.truncf %21 : vector<16x128xf32> to vector<16x128xbf16>
    %cst_16 = arith.constant dense<0.000000e+00> : vector<16x128xf32>
    %25 = tpu.matmul %24, %22, %cst_16 {dimension_numbers = #tpu.dot_dimension_numbers<[1], [0], [0], [1], [0, 0, 1, 1], [], []>} : vector<16x128xbf16>, vector<128x128xbf16>, vector<16x128xf32> -> vector<16x128xf32>
    %26 = vector.broadcast %23 : vector<1x128xf32> to vector<16x128xf32>
    %27 = arith.addf %25, %26 : vector<16x128xf32>
    %cst_17 = arith.constant 0.000000e+00 : f32
    %28 = vector.broadcast %cst_17 : f32 to vector<16x128xf32>
    %29 = arith.maximumf %27, %28 : vector<16x128xf32>
    %30 = arith.addf %29, %21 : vector<16x128xf32>
    %c0_18 = arith.constant 0 : index
    %c0_19 = arith.constant 0 : index
    %31 = vector.load %arg8[%c0_18, %c0_19] : memref<128x128xbf16, #tpu.memory_space<vmem>>, vector<128x128xbf16>
    %c0_20 = arith.constant 0 : index
    %c0_21 = arith.constant 0 : index
    %32 = vector.load %arg9[%c0_20, %c0_21] : memref<1x128xf32, #tpu.memory_space<vmem>>, vector<1x128xf32>
    %33 = arith.truncf %30 : vector<16x128xf32> to vector<16x128xbf16>
    %cst_22 = arith.constant dense<0.000000e+00> : vector<16x128xf32>
    %34 = tpu.matmul %33, %31, %cst_22 {dimension_numbers = #tpu.dot_dimension_numbers<[1], [0], [0], [1], [0, 0, 1, 1], [], []>} : vector<16x128xbf16>, vector<128x128xbf16>, vector<16x128xf32> -> vector<16x128xf32>
    %35 = vector.broadcast %32 : vector<1x128xf32> to vector<16x128xf32>
    %36 = arith.addf %34, %35 : vector<16x128xf32>
    %c0_23 = arith.constant 0 : index
    %c0_24 = arith.constant 0 : index
    %37 = vector.load %arg10[%c0_23, %c0_24] : memref<16x128xf32, #tpu.memory_space<vmem>>, vector<16x128xf32>
    tpu.vector_store %arg10[%c0_23, %c0_24], %36 {strides = array<i32>} : memref<16x128xf32, #tpu.memory_space<vmem>>, vector<16x128xf32>,
    return
  }
  func.func @transform_0(%arg0: i32) -> (i32, i32) {
    %c0_i32 = arith.constant 0 : i32
    %c0_i32_0 = arith.constant 0 : i32
    return %arg0, %c0_i32 : i32, i32
  }
  func.func @transform_1(%arg0: i32) -> (i32, i32) {
    %c0_i32 = arith.constant 0 : i32
    %c0_i32_0 = arith.constant 0 : i32
    %c0_i32_1 = arith.constant 0 : i32
    return %c0_i32, %c0_i32_0 : i32, i32
  }
  func.func @transform_2(%arg0: i32) -> (i32, i32) {
    %c0_i32 = arith.constant 0 : i32
    %c0_i32_0 = arith.constant 0 : i32
    %c0_i32_1 = arith.constant 0 : i32
    return %c0_i32, %c0_i32_0 : i32, i32
  }
  func.func @transform_3(%arg0: i32) -> (i32, i32) {
    %c0_i32 = arith.constant 0 : i32
    %c0_i32_0 = arith.constant 0 : i32
    %c0_i32_1 = arith.constant 0 : i32
    return %c0_i32, %c0_i32_0 : i32, i32
  }
  func.func @transform_4(%arg0: i32) -> (i32, i32) {
    %c0_i32 = arith.constant 0 : i32
    %c0_i32_0 = arith.constant 0 : i32
    %c0_i32_1 = arith.constant 0 : i32
    return %c0_i32, %c0_i32_0 : i32, i32
  }
  func.func @transform_5(%arg0: i32) -> (i32, i32) {
    %c0_i32 = arith.constant 0 : i32
    %c0_i32_0 = arith.constant 0 : i32
    %c0_i32_1 = arith.constant 0 : i32
    return %c0_i32, %c0_i32_0 : i32, i32
  }
  func.func @transform_6(%arg0: i32) -> (i32, i32) {
    %c0_i32 = arith.constant 0 : i32
    %c0_i32_0 = arith.constant 0 : i32
    %c0_i32_1 = arith.constant 0 : i32
    return %c0_i32, %c0_i32_0 : i32, i32
  }
  func.func @transform_7(%arg0: i32) -> (i32, i32) {
    %c0_i32 = arith.constant 0 : i32
    %c0_i32_0 = arith.constant 0 : i32
    %c0_i32_1 = arith.constant 0 : i32
    return %c0_i32, %c0_i32_0 : i32, i32
  }
  func.func @transform_8(%arg0: i32) -> (i32, i32) {
    %c0_i32 = arith.constant 0 : i32
    %c0_i32_0 = arith.constant 0 : i32
    %c0_i32_1 = arith.constant 0 : i32
    return %c0_i32, %c0_i32_0 : i32, i32
  }
  func.func @transform_9(%arg0: i32) -> (i32, i32) {
    %c0_i32 = arith.constant 0 : i32
    %c0_i32_0 = arith.constant 0 : i32
    return %arg0, %c0_i32 : i32, i32
  }
}

</mosaic_0001>

<bundles_post_ra>
// kernel: tpu_custom_call.1
= control target key start
LH: loop header
LB: loop body
LE: loop exit
PB: predicated region body
PF: predicated region fallthrough
CT: control target
= control target key end

     0   :  { %s1507_s0 = inlined_call_operand.vmem [shape: bf16[32,16], index: 0, kind: input, shape index: {}]   ;;  %s1508_s1 = inlined_call_operand.vmem [shape: bf16[16,256], index: 1, kind: input, shape index: {}]   ;;  %s1509_s2 = inlined_call_operand.vmem [shape: f32[1,128], index: 2, kind: input, shape index: {}]   ;;  %s1510_s3 = inlined_call_operand.hbm [shape: bf16[128,256], index: 3, kind: input, shape index: {}]   ;;  %s1511_s4 = inlined_call_operand.vmem [shape: f32[1,128], index: 4, kind: input, shape index: {}]   ;;  %s1512_s5 = inlined_call_operand.hbm [shape: bf16[128,128], index: 5, kind: input, shape index: {}]   ;;  %s1513_s6 = inlined_call_operand.vmem [shape: f32[1,128], index: 6, kind: input, shape index: {}]   ;;  %s1514_s7 = inlined_call_operand.hbm [shape: bf16[128,128], index: 7, kind: input, shape index: {}]   ;;  %s1515_s8 = inlined_call_operand.vmem [shape: f32[1,128], index: 8, kind: input, shape index: {}]   ;;  %s1516_s9 = inlined_call_operand.hbm [shape: f32[32,128], index: 9, kind: output, shape index: {}]  }
   0x1   :  { %1518 = sst [smem:[#allocation14_spill]] %s1510_s3 }
   0x2   :  { %1519 = sst [smem:[#allocation15_spill]] %s1512_s5 }
   0x3   :  { %14 = vsyncpa [#allocation3], 0 }
   0x4   :  { %15 = vsyncpa [#allocation6], 0 }
   0x5   :  { %16 = vsyncpa [#allocation4], 0 }
   0x6   :  { %18 = vsyncpa [#allocation4 + $0x1], 0  ;;  %s1359_s30 = smov 0   ;;  %s1361_s10 = smov 0  }
   0x7   :  { %s1363_s11 = smov 0   ;;  %s1365_s12 = smov 0  }
   0x8 LB: > { %1520 = sst [smem:[#allocation12_spill]] %s1294_s11  ;;  %s1380_s13 = sadd.s32 4294967295, %s1298_s12   ;;  %s1298_s12 = sphi %s1365_s12, %s1532_s12   ;;  %s1294_s11 = sphi %s1363_s11, %s1529_s11   ;;  %s1290_s10 = sphi %s1361_s10, %s1531_s10   ;;  %s1286_s30 = sphi %s1359_s30, %s1530_s30  }
   0x9   : > { %s862_s14 = sadd.s32 4294967294, %s1298_s12   ;;  %s1384_s15 = sadd.s32 1, %s1298_s12  }
   0xa   : > { %s225_s16 = sadd.s32 1, %s1294_s11  ;;  %s222_s17 = ssub.s32 %s1298_s12, %s1384_s15 }
   0xb   : > { %p235_p0 = scmp.ne.s32.totalorder %s1294_s11, %s1290_s10  ;;  %p223_p1 = scmp.eq.s32.totalorder %s222_s17, 0 }
   0xc   : > { %p236_p2 = scmp.eq.s32.totalorder %s1380_s13, 1  ;;  %p241_p3 = scmp.ne.s32.totalorder %s1290_s10, %s1286_s30 }
   0xd   : > { %p242_p4 = scmp.eq.s32.totalorder %s862_s14, 1  ;;  %p863_p7 = scmp.ge.s32.totalorder %s1298_s12, 1 }
   0xe   : > { %s1395_s18 = scalar_select %p223_p1, %s1294_s11, %s225_s16  }
   0xf   : > { %p1397_p5 = por %p236_p2, %p235_p0  ;;  %p1401_p6 = por %p242_p4, %p241_p3 }
  0x10   : > { %1521 = sst [smem:[#allocation13_spill]] %s1395_s18  ;;  %p249_p8 = scmp.lt.s32.totalorder %s1298_s12, 3 }
  0x11   : > { %p1086_p9 = scmp.eq.s32.totalorder %s1380_s13, 0  ;;  %s1525_s5 = sld [smem:[#allocation15_spill]] }
  0x12   : > { %p1408_p10 = pnand %p863_p7, %p249_p8  ;;  %s1300_s25 = smov [#allocation5]  }
  0x13   : > { %s285_s26 = sshll.u32 %s1300_s25, 4  ;;  %s1527_s3 = sld [smem:[#allocation14_spill]]  ;;  %s286_s26 = int_to_ptr.vmem [resolvable:$true] %s285_s26 }
  0x14   : > { %p1072_p11 = pneg %p1408_p10  ;;  %s1301_s16 = smov 64  }
  0x15   : > { %s1302_s17 = smov 4   ;;  %s1303_s22 = smov [#allocation2]  }
  0x16   : > { %p1419_p12 = pnand %p1086_p9, %p1072_p11  ;;  %s268_s23 = sshll.u32 %s1303_s22, 4  ;;  %s269_s23 = int_to_ptr.vmem [resolvable:$true] %s268_s23 }
  0x17   : > { %s283_s24 = sshll.u32 %s1525_s5, 4  ;;  %s1304_s25 = smov 128   ;;  %s284_s24 = int_to_ptr.hbm [resolvable:$true] %s283_s24 }
  0x18   : > { %1078 = dma.hbm_to_vmem [thread:$0]  (!%p1419_p12), %s284_s24, 1024, %s286_s26, [#allocation6], %s1301_s16, %s1301_s16, %s1302_s17  }
  0x19   : > { %s266_s14 = sshll.u32 %s1527_s3, 4  ;;  %s1305_s5 = smov 8   ;;  %s267_s14 = int_to_ptr.hbm [resolvable:$true] %s266_s14 }
  0x1a   : > { %1075 = dma.hbm_to_vmem [thread:$0]  (!%p1419_p12), %s267_s14, 2048, %s269_s23, [#allocation3], %s1304_s25, %s1304_s25, %s1305_s5  }
  0x1b   : > { %s300_s28 = sshll.u32 %s1514_s7, 4  ;;  %s1306_s29 = smov [#allocation7]   ;;  %s301_s28 = int_to_ptr.hbm [resolvable:$true] %s300_s28 }
  0x1c   : > { %s302_s3 = sshll.u32 %s1306_s29, 4  ;;  %330 = sbr.rel (%p1408_p10) target bundleno = 615 (0x267), region = 56  ;;  %s303_s3 = int_to_ptr.vmem [resolvable:$true] %s302_s3 }
  0x1d   : > { %1081 = dma.hbm_to_vmem [thread:$0]  (!%p1419_p12), %s301_s28, 1024, %s303_s3, [#allocation6], %s1301_s16, %s1301_s16, %s1302_s17  }
  0x21   : > { %1273 = dma.done.wait (%p1086_p9), [#allocation3], 2048  }
  0x22   : > { %1275 = vsyncadd (%p1086_p9), [#allocation3], 4294965248 }
  0x23   : > { %1277 = dma.done.wait (%p1086_p9), [#allocation6], 2048  }
  0x24   : > { %1279 = vsyncadd (%p1086_p9), [#allocation6], 4294965248  ;;  %s873_s5 = sshll.u32 %s1380_s13, 1  ;;  %v881_v0 = vld [vmem:[%s1508_s1] sm:$0xf]  ;;  %vm405_vm0 = vcmask 130048  }
  0x25   : > { %p378_p13 = scmp.lt.s32.totalorder %s873_s5, 3  ;;  %v1024_v1 = vld [vmem:[%s1508_s1 + $0x4] sm:$0xf0]  ;;  %v1023_v2 = vld [vmem:[%s1508_s1 + $0x4] sm:$0xf]  ;;  %v1048_v55 = vld [vmem:[#allocation5 + $0x38] sm:$0xff] }
  0x26   : > { %v882_v3 = vor.u32 %v1024_v1, %v881_v0  ;;  %v883_v4 = vld [vmem:[%s1508_s1 + $0x8] sm:$0xf0]  ;;  %v947_v6 = vld [vmem:[#allocation2 + $0x70] sm:$0xf]  ;;  %v1040_v8 = vld [vmem:[#allocation2 + $0x74] sm:$0xf0] }
  0x27   : > { %s1534_s5 = smov (!%p378_p13, %s873_s5), 3  ;;  %v886_v7 = vor.u32 %v1023_v2, %v883_v4  ;;  %v1039_v9 = vld [vmem:[#allocation2 + $0x74] sm:$0xf]  ;;  %v949_v10 = vld [vmem:[#allocation2 + $0x78] sm:$0xf0]  ;;  %v948_v11 = vor.u32 %v1040_v8, %v947_v6  ;;  %v1046_v57 = vld [vmem:[#allocation5 + $0x28] sm:$0xff] }
  0x28   : > { %s874_s3 = sshll.u32 %s1534_s5, 2  ;;  %416 = vmatpush.bf16.msra.mxu0 %v882_v3  ;;  %v952_v12 = vor.u32 %v1039_v9, %v949_v10  ;;  %v939_v13 = vld [vmem:[#allocation2 + $0x60] sm:$0xf]  ;;  %v1038_v14 = vld [vmem:[#allocation2 + $0x64] sm:$0xf0]  ;;  %v1047_v56 = vld [vmem:[#allocation5 + $0x30] sm:$0xff] }
  0x29   : > { %s381_s21 = scalar_lea.vmem %s1507_s0, %s874_s3  ;;  %v1037_v15 = vld [vmem:[#allocation2 + $0x64] sm:$0xf]  ;;  %430 = vmatpush.bf16.msra.mxu1 %v886_v7  ;;  %v941_v16 = vld [vmem:[#allocation2 + $0x68] sm:$0xf0]  ;;  %544 = vmatpush.bf16.msra.mxu2 %v948_v11  ;;  %v940_v17 = vor.u32 %v1038_v14, %v939_v13  ;;  %v931_v19 = vld [vmem:[#allocation2 + $0x50] sm:$0xf] }
  0x2a   : > { %v1022_v5 = vld [vmem:[%s381_s21] sm:$0xff]  ;;  %558 = vmatpush.bf16.msra.mxu3 %v952_v12  ;;  %v944_v18 = vor.u32 %v1037_v15, %v941_v16  ;;  %v1036_v20 = vld [vmem:[#allocation2 + $0x54] sm:$0xf0]  ;;  %v1035_v21 = vld [vmem:[#allocation2 + $0x54] sm:$0xf]  ;;  %s374_s18 = sand.u32 1, %s1290_s10  }
  0x2b   : > { %887 = vmatmul.msk.bf16.vlgmr.msra.gmra.mxu0 %vm405_vm0, %v1022_v5  ;;  %v933_v22 = vld [vmem:[#allocation2 + $0x58] sm:$0xf0]  ;;  %v932_v23 = vor.u32 %v1036_v20, %v931_v19  ;;  %v923_v25 = vld [vmem:[#allocation2 + $0x40] sm:$0xf]  ;;  %v1034_v26 = vld [vmem:[#allocation2 + $0x44] sm:$0xf0] }
  0x2c   : > { %888 = vmatmul.msk.bf16.vlgmr.msra.gmra.mxu1 %vm405_vm0, %v1022_v5  ;;  %v936_v24 = vor.u32 %v1035_v21, %v933_v22  ;;  %v1033_v27 = vld [vmem:[#allocation2 + $0x44] sm:$0xf]  ;;  %v925_v28 = vld [vmem:[#allocation2 + $0x48] sm:$0xf0]  ;;  %v924_v29 = vor.u32 %v1034_v26, %v923_v25  ;;  %v915_v31 = vld [vmem:[#allocation2 + $0x30] sm:$0xf]  ;;  %650 = vmatpush.bf16.msrb.mxu0 %v1048_v55 }
  0x2d   : > { %545 = vmatpush.bf16.msra.mxu2 %v940_v17  ;;  %v928_v30 = vor.u32 %v1033_v27, %v925_v28  ;;  %v1032_v32 = vld [vmem:[#allocation2 + $0x34] sm:$0xf0]  ;;  %v1031_v34 = vld [vmem:[#allocation2 + $0x34] sm:$0xf]  ;;  %v917_v35 = vld [vmem:[#allocation2 + $0x38] sm:$0xf0] }
  0x2e   : > { %559 = vmatpush.bf16.msra.mxu3 %v944_v18  ;;  %v916_v33 = vor.u32 %v1032_v32, %v915_v31  ;;  %v920_v36 = vor.u32 %v1031_v34, %v917_v35  ;;  %v907_v37 = vld [vmem:[#allocation2 + $0x20] sm:$0xf]  ;;  %v1030_v38 = vld [vmem:[#allocation2 + $0x24] sm:$0xf0]  ;;  %v1029_v39 = vld [vmem:[#allocation2 + $0x24] sm:$0xf] }
  0x2f   : > { %v908_v40 = vor.u32 %v1030_v38, %v907_v37  ;;  %v909_v41 = vld [vmem:[#allocation2 + $0x28] sm:$0xf0]  ;;  %v899_v43 = vld [vmem:[#allocation2 + $0x10] sm:$0xf]  ;;  %v1028_v44 = vld [vmem:[#allocation2 + $0x14] sm:$0xf0] }
  0x30   : > { %v912_v42 = vor.u32 %v1029_v39, %v909_v41  ;;  %v1027_v45 = vld [vmem:[#allocation2 + $0x14] sm:$0xf]  ;;  %v900_v46 = vor.u32 %v1028_v44, %v899_v43  ;;  %v901_v47 = vld [vmem:[#allocation2 + $0x18] sm:$0xf0]  ;;  %v891_v49 = vld [vmem:[#allocation2] sm:$0xf]  ;;  %651 = vmatpush.bf16.msrb.mxu0 %v1047_v56 }
  0x31   : > { %546 = vmatpush.bf16.msra.mxu2 %v932_v23  ;;  %v904_v48 = vor.u32 %v1027_v45, %v901_v47  ;;  %v1026_v50 = vld [vmem:[#allocation2 + $0x4] sm:$0xf0]  ;;  %v1025_v51 = vld [vmem:[#allocation2 + $0x4] sm:$0xf]  ;;  %v893_v53 = vld [vmem:[#allocation2 + $0x8] sm:$0xf0] }
  0x32   : > { %560 = vmatpush.bf16.msra.mxu3 %v936_v24  ;;  %v892_v52 = vor.u32 %v1026_v50, %v891_v49  ;;  %v896_v54 = vor.u32 %v1025_v51, %v893_v53  ;;  %v1045_v58 = vld [vmem:[#allocation5 + $0x20] sm:$0xff]  ;;  %v1044_v7 = vld [vmem:[#allocation5 + $0x18] sm:$0xff]  ;;  %v1043_v8 = vld [vmem:[#allocation5 + $0x10] sm:$0xff]  ;;  %s872_s21 = sshll.u32 %s374_s18, 4  ;;  %s1057_s27 = sshll.u32 %s1380_s13, 4 }
  0x33   : > { %v1134_v60 = vld [vmem:[%s1509_s2] ss:$0 sm:$0xff]  ;;  %v1042_v9 = vld [vmem:[#allocation5 + $0x8] sm:$0xff]  ;;  %v1056_v11 = vld [vmem:[#allocation7 + $0x38] sm:$0xff]  ;;  %s376_s14 = scalar_lea.vmem [#allocation8], %s872_s21  ;;  %s765_s22 = scalar_lea.hbm %s1516_s9, %s1057_s27 }
  0x34   : > { %652 = vmatpush.bf16.msrb.mxu0 %v1046_v57  ;;  %v1041_v10 = vld [vmem:[#allocation5] sm:$0xff]  ;;  %737 = vmatpush.bf16.msrb.mxu1 %v1056_v11  ;;  %v1055_v12 = vld [vmem:[#allocation7 + $0x30] sm:$0xff]  ;;  %v1054_v13 = vld [vmem:[#allocation7 + $0x28] sm:$0xff]  ;;  %s766_s23 = sshll.u32 %s376_s14, 4  ;;  %s768_s25 = sshll.u32 %s765_s22, 4  ;;  %s767_s23 = int_to_ptr.vmem [resolvable:$true] %s766_s23  ;;  %s769_s25 = int_to_ptr.hbm [resolvable:$true] %s768_s25 }
  0x35   : > { %547 = vmatpush.bf16.msra.mxu2 %v924_v29  ;;  %v1053_v14 = vld [vmem:[#allocation7 + $0x20] sm:$0xff]  ;;  %v1052_v27 = vld [vmem:[#allocation7 + $0x18] sm:$0xff]  ;;  %v1051_v28 = vld [vmem:[#allocation7 + $0x10] sm:$0xff]  ;;  %s754_s28 = scalar_lea.sflag [#allocation4], %s374_s18  ;;  %s1242_s29 = sshra.s32 %s769_s25, 4  ;;  %s1243_s29 = int_to_ptr.hbm [resolvable:$true] %s1242_s29 }
  0x36   : > { %561 = vmatpush.bf16.msra.mxu3 %v928_v30  ;;  %v1135_v16 = vld [vmem:[%s1511_s4] ss:$0 sm:$0xff]  ;;  %v1050_v29 = vld [vmem:[#allocation7 + $0x8] sm:$0xff]  ;;  %s1244_s5 = scalar_lea.hbm %s1243_s29, 16  ;;  %s1248_s11 = scalar_lea.hbm %s1516_s9, 32 }
  0x37   : > { %v1049_v30 = vld [vmem:[#allocation7] sm:$0xff]  ;;  %p1245_p0 = scmp.ne.s32.totalorder %s1243_s29, %s1244_s5  ;;  %p1249_p3 = scmp.lt.s32.totalorder %s1243_s29, %s1516_s9 }
  0x38   : > { %653 = vmatpush.bf16.msrb.mxu0 %v1045_v58  ;;  %738 = vmatpush.bf16.msrb.mxu1 %v1055_v12  ;;  %v1136_v32 = vld [vmem:[%s1513_s6] ss:$0 sm:$0xff]  ;;  %p1250_p4 = scmp.lt.s32.totalorder %s1248_s11, %s1244_s5 }
  0x39   : > { %548 = vmatpush.bf16.msra.mxu2 %v916_v33  ;;  %v1137_v41 = vld [vmem:[%s1515_s8] ss:$0 sm:$0xff]  ;;  %p1246_p1 = pnand %p1245_p0, %p1397_p5 }
  0x3a   : > { %562 = vmatpush.bf16.msra.mxu3 %v920_v36  ;;  %p1251_p7 = por %p1250_p4, %p1249_p3 }
  0x3b   : > { %p1247_p2 = pneg %p1246_p1 }
  0x3c   : > { %654 = vmatpush.bf16.msrb.mxu0 %v1044_v7  ;;  %739 = vmatpush.bf16.msrb.mxu1 %v1054_v13 }
  0x3d   : > { %549 = vmatpush.bf16.msra.mxu2 %v908_v40  ;;  %p1252_p8 = pnand %p1251_p7, %p1247_p2 }
  0x3e   : > { %563 = vmatpush.bf16.msra.mxu3 %v912_v42 }
  0x40   : > { %655 = vmatpush.bf16.msrb.mxu0 %v1043_v8  ;;  %740 = vmatpush.bf16.msrb.mxu1 %v1053_v14 }
  0x41   : > { %550 = vmatpush.bf16.msra.mxu2 %v900_v46 }
  0x42   : > { %564 = vmatpush.bf16.msra.mxu3 %v904_v48 }
  0x44   : > { %656 = vmatpush.bf16.msrb.mxu0 %v1042_v9  ;;  %741 = vmatpush.bf16.msrb.mxu1 %v1052_v27 }
  0x45   : > { %551 = vmatpush.bf16.msra.mxu2 %v892_v52 }
  0x46   : > { %565 = vmatpush.bf16.msra.mxu3 %v896_v54 }
  0x48   : > { %657 = vmatpush.bf16.msrb.mxu0 %v1041_v10  ;;  %742 = vmatpush.bf16.msrb.mxu1 %v1051_v28 }
  0x4c   : > { %743 = vmatpush.bf16.msrb.mxu1 %v1050_v29 }
  0x50   : > { %744 = vmatpush.bf16.msrb.mxu1 %v1049_v30 }
  0xa8   : > { %v418_v59 = vpop.f32.mrf.mxu0 }
  0xa9   : > { %v432_v61 = vpop.f32.mrf.mxu1  ;;  %v440_v62 = vadd.f32 %v1134_v60, %v418_v59 }
  0xab   : > { %v442_v0 = vmax.f32 %v440_v62, 0.0 }
  0xad   : > { %v444_v4 = vadd.f32 %v442_v0, %v432_v61 }
  0xb0   : > { %v420_v63 = vpop.f32.mrf.mxu0 }
  0xb1   : > { %v441_v1 = vadd.f32 %v1134_v60, %v420_v63  ;;  %v434_v3 = vpop.f32.mrf.mxu1 }
  0xb3   : > { %v443_v2 = vmax.f32 %v441_v1, 0.0 }
  0xb5   : > { %v445_v5 = vadd.f32 %v443_v2, %v434_v3 }
  0xb7   : > { %v463_v6 = vpack.c.bf16 %v445_v5, %v444_v4 }
  0xb9   : > { %552 = vmatmul.bf16.vlgmr.msra.gmra.mxu2 %v463_v6  ;;  %566 = vmatmul.bf16.vlgmr.msra.gmra.mxu3 %v463_v6 }
 0x13c   : > { %v553_v15 = vpop.f32.mrf.mxu2  ;;  %v567_v17 = vpop.f32.mrf.mxu3 }
 0x13d   : > { %v575_v18 = vadd.f32 %v1135_v16, %v553_v15 }
 0x13f   : > { %v577_v20 = vmax.f32 %v575_v18, 0.0 }
 0x141   : > { %v579_v24 = vadd.f32 %v577_v20, %v567_v17 }
 0x144   : > { %v555_v19 = vpop.f32.mrf.mxu2  ;;  %v569_v23 = vpop.f32.mrf.mxu3 }
 0x145   : > { %v576_v21 = vadd.f32 %v1135_v16, %v555_v19 }
 0x147   : > { %v578_v22 = vmax.f32 %v576_v21, 0.0 }
 0x149   : > { %v580_v25 = vadd.f32 %v578_v22, %v569_v23 }
 0x14b   : > { %v598_v26 = vpack.c.bf16 %v580_v25, %v579_v24 }
 0x14d   : > { %658 = vmatmul.bf16.vlgmr.msrb.gmra.mxu0 %v598_v26 }
 0x1ca   : > { %v659_v31 = vpop.f32.mrf.mxu0 }
 0x1cb   : > { %v660_v33 = vadd.f32 %v1136_v32, %v659_v31 }
 0x1cd   : > { %v664_v35 = vmax.f32 %v660_v33, 0.0 }
 0x1cf   : > { %v666_v38 = vadd.f32 %v664_v35, %v579_v24 }
 0x1d2   : > { %v661_v34 = vpop.f32.mrf.mxu0 }
 0x1d3   : > { %v662_v36 = vadd.f32 %v1136_v32, %v661_v34 }
 0x1d5   : > { %v665_v37 = vmax.f32 %v662_v36, 0.0 }
 0x1d7   : > { %v667_v39 = vadd.f32 %v665_v37, %v580_v25 }
 0x1d9   : > { %v685_v40 = vpack.c.bf16 %v667_v39, %v666_v38 }
 0x1db   : > { %745 = vmatmul.bf16.vlgmr.msrb.gmra.mxu1 %v685_v40 }
 0x258   : > { %v746_v42 = vpop.f32.mrf.mxu1 }
 0x259   : > { %v747_v43 = vadd.f32 %v1137_v41, %v746_v42 }
 0x25b   : > { %751 = vst [vmem:[%s376_s14] sm:$0xff] %v747_v43 }
 0x260   : > { %v748_v44 = vpop.f32.mrf.mxu1 }
 0x261   : > { %v749_v45 = vadd.f32 %v1137_v41, %v748_v44 }
 0x263   : > { %752 = vst [vmem:[%s376_s14 + $0x8] sm:$0xff] %v749_v45 }
 0x264   : > { %1255 = shalt.err (!%p1252_p8)
}
 0x265   : > { %s1307_s18 = smov 128   ;;  %s1308_s26 = smov 8  }
 0x266   : > { %1070 = dma.vmem_to_hbm [thread:$0]  (%p1397_p5), %s767_s23, 256, %s769_s25, %s754_s28, %s1307_s18, %s1307_s18, %s1308_s26  }
 0x267 PF: > { %p1092_p9 = scmp.ge.s32.totalorder %s1298_s12, 2  ;;  %s783_s27 = sand.u32 1, %s1286_s30  }
 0x268   : > { %s784_s14 = scalar_lea.sflag [#allocation4], %s783_s27 }
 0x269   : > { %p1083_p10 = pnand %p1092_p9, %p1401_p6 }
 0x26b   : > { %p1084_p11 = pneg %p1083_p10 }
 0x26d   : > { %1281 = dma.done.wait (%p1084_p11), %s784_s14, 256  }
 0x26e   : > { %1283 = vsyncadd (%p1084_p11), %s784_s14, 4294967040  ;;  %s1528_s16 = sld [smem:[#allocation12_spill]]  ;;  %p21_p12 = scmp.ge.s32.totalorder %s1384_s15, 4  }
 0x26f   : > { %s1529_s11 = sld [smem:[#allocation13_spill]]  ;;  %s1530_s30 = smov %s1290_s10 }
 0x270   : > { %s1532_s12 = smov %s1384_s15  ;;  %23 = sbr.rel (!%p21_p12) target bundleno = 8 (0x8), region = 104 }
 0x274   : > { %s1531_s10 = smov %s1528_s16 }
 0x275   :  { %790 = vsyncpa [#allocation3], 1 }
 0x276   :  { %792 = vsyncpa [#allocation3 + $0x1], 1 }
 0x277   :  { %793 = vsyncpa [#allocation6], 1 }
 0x278   :  { %794 = vsyncpa [#allocation4], 1 }
 0x279   :  { %796 = vsyncpa [#allocation4 + $0x1], 1 }

</bundles_post_ra>
